<compile_context>
chip_gen: v7x
topology: tpu7x:2x2x1
jax: 0.10.0
libtpu: 0.0.40
codegen_flags: <defaults>
</compile_context>

<pallas_src>
import functools

import jax
import jax.numpy as jnp
from jax.experimental import pallas as pl
from jax.experimental.pallas import tpu as pltpu

_MIB = 1024 * 1024


def _layernorm2d_kernel(x_ref, o_ref, *, epsilon: float, reduce_size: int):
    """Block = (bn, r, 128): bn whole samples, each sample laid out lane-dense.

    Single-pass stats: sum and sum-of-squares in one traversal (f32 accum).
    Zero padding added by the wrapper contributes 0 to both sums, so dividing
    by the *true* element count `reduce_size` keeps mean/var exact.
    """
    x = x_ref[...].astype(jnp.float32)
    d = reduce_size
    s = jnp.sum(x, axis=(-2, -1), keepdims=True)           # (bn, 1, 1)
    sq = jnp.sum(x * x, axis=(-2, -1), keepdims=True)      # (bn, 1, 1)
    mean = s * (1.0 / d)
    # Unbiased variance (Bessel's correction) == torch.Tensor.var default.
    denom = max(d - 1, 1)
    var = jnp.maximum((sq - s * mean) * (1.0 / denom), 0.0)
    inv = jax.lax.rsqrt(var + epsilon)                      # rsqrt on EUP slot
    o_ref[...] = ((x - mean) * inv).astype(o_ref.dtype)


def _tpu_budgets():
    """Per-generation (block_budget_bytes, vmem_limit_bytes)."""
    vmem_cap = 128 * _MIB
    try:
        info = pltpu.get_tpu_info()
        cap = getattr(info, "vmem_capacity_bytes", None)
        if cap:
            vmem_cap = int(cap)
    except Exception:
        pass
    if vmem_cap <= 64 * _MIB:
        # v7x-class (64 MiB physical per TC): ~3 MiB blocks; keep total live
        # (2x in + 2x out pipeline buffers + ~3 blocks of f32 temps) << 44 MiB.
        return 3 * _MIB, 44 * _MIB
    # v5e / v6e (128 MiB physical): bigger blocks amortize ~0.35 us/step.
    return 6 * _MIB, 64 * _MIB


def _pick_batch_block(n: int, sample_bytes: int, budget_bytes: int,
                      *, min_steps: int = 4, step_multiple: int = 2) -> int:
    """Pick samples-per-block `bn` (a divisor of n).

    Preference order:
      1. grid length n // bn >= min_steps   (real double-buffered pipelining
         instead of one monolithic DMA -> compute -> writeback),
      2. grid length divisible by step_multiple (even split across v7x's two
         TensorCores; harmless tie-break on 1-TC chips),
      3. largest bn whose block still fits the VMEM block budget.
    """
    divisors = [bd for bd in range(1, n + 1) if n % bd == 0]
    fits = [bd for bd in divisors if bd * sample_bytes <= budget_bytes] or [1]

    def score(bn):
        steps = n // bn
        return (min(steps, min_steps), steps % step_multiple == 0, bn)

    return max(fits, key=score)


def layernorm2d(x: jax.Array, epsilon: float = 1e-8) -> jax.Array:
    """x: (N, C, H, W) -> (N, C, H, W), normalized per-sample over C,H,W."""
    n, c, h, w = x.shape
    d = c * h * w
    itemsize = jnp.dtype(x.dtype).itemsize

    # Lane-dense per-sample layout: each sample becomes (r, 128).  If C*H*W is
    # not a multiple of 128, zero-pad each sample up to a multiple of 1024
    # (= 8x128, fills sublanes too) so every load/store is unmasked and
    # lane-dense; the kernel divides by the true D so padding doesn't bias
    # the statistics.
    if d % 128 == 0:
        # If (d // 128) % 8 != 0 there is some sublane padding inside vregs,
        # but avoiding it would cost a full HBM pad copy on a mem-bound kernel.
        d_pad = d
    else:
        d_pad = -(-d // 1024) * 1024
    r, l = d_pad // 128, 128

    x2 = x.reshape(n, d)
    if d_pad != d:
        x2 = jnp.pad(x2, ((0, 0), (0, d_pad - d)))
    x3 = x2.reshape(n, r, l)

    block_budget, vmem_limit = _tpu_budgets()
    bn = _pick_batch_block(n, d_pad * itemsize, block_budget)
    grid = (n // bn,)
    block_bytes = bn * d_pad * itemsize
    if block_bytes > block_budget:
        # A single sample exceeds the per-block budget: grow the scoped VMEM
        # limit toward what the whole-sample block needs (2x in + 2x out
        # pipeline buffers + ~3 blocks of f32 temporaries).
        vmem_limit = max(vmem_limit, 4 * block_bytes + 3 * bn * d_pad * 4 + 2 * _MIB)
    # TODO(synk): for a single sample whose C*H*W exceeds even the physical
    # VMEM, add a D-axis ("arbitrary") reduction grid with per-sample
    # sum/sumsq VMEM accumulators instead of whole-sample blocks.

    kernel = functools.partial(_layernorm2d_kernel,
                               epsilon=float(epsilon), reduce_size=d)

    out3 = pl.pallas_call(
        kernel,
        out_shape=jax.ShapeDtypeStruct((n, r, l), x.dtype),
        grid_spec=pl.GridSpec(
            grid=grid,
            in_specs=[pl.BlockSpec((bn, r, l), lambda i: (i, 0, 0))],
            out_specs=pl.BlockSpec((bn, r, l), lambda i: (i, 0, 0)),
        ),
        compiler_params=pltpu.CompilerParams(
            dimension_semantics=("parallel",),
            vmem_limit_bytes=int(vmem_limit),
        ),
        cost_estimate=pl.CostEstimate(
            flops=5 * n * d_pad,
            transcendentals=n,
            bytes_accessed=2 * n * d_pad * itemsize,
        ),
    )(x3)

    out2 = out3.reshape(n, d_pad)
    if d_pad != d:
        out2 = out2[:, :d]
    return out2.reshape(n, c, h, w)


if __name__ == "__main__":
    key = jax.random.PRNGKey(0)
    x = jax.random.normal(key, (2, 4, 16, 16), dtype=jnp.float32)

    out = layernorm2d(x, epsilon=1e-8)
    jax.block_until_ready(out)

    # Reference: plain-JAX, unbiased variance (ddof=1) like torch.Tensor.var.
    mean = jnp.mean(x, axis=(1, 2, 3), keepdims=True)
    var = jnp.var(x, axis=(1, 2, 3), keepdims=True, ddof=1)
    ref = (x - mean) / jnp.sqrt(var + 1e-8)
    assert jnp.allclose(out, ref, atol=1e-5, rtol=1e-5), "mismatch vs reference"

    print("KERNEL_OK")
</pallas_src>

<mosaic_0001>
module attributes {stable_mosaic.version = 11 : i64} {
  func.func @_layernorm2d_kernel(%arg0: i32, %arg1: memref<1x8x128xf32, #tpu.memory_space<vmem>>, %arg2: memref<1x8x128xf32, #tpu.memory_space<vmem>>) attributes {dimension_semantics = [#tpu.dimension_semantics<parallel>], iteration_bounds = array<i64: 2>, scalar_prefetch = 0 : i64, scratch_operands = 0 : i64, tpu.core_type = #tpu.core_type<tc>, window_params = [{transform_indices = @transform_0, window_bounds = array<i64: 1, 8, 128>}, {transform_indices = @transform_1, window_bounds = array<i64: 1, 8, 128>}]} {
    %c0 = arith.constant 0 : index
    %c0_0 = arith.constant 0 : index
    %c0_1 = arith.constant 0 : index
    %0 = vector.load %arg1[%c0, %c0_0, %c0_1] : memref<1x8x128xf32, #tpu.memory_space<vmem>>, vector<1x8x128xf32>
    %cst = arith.constant dense<0.000000e+00> : vector<1xf32>
    %1 = vector.multi_reduction <add>, %0, %cst [1, 2] : vector<1x8x128xf32> to vector<1xf32>
    %2 = vector.shape_cast %1 : vector<1xf32> to vector<1x1x1xf32>
    %3 = arith.mulf %0, %0 : vector<1x8x128xf32>
    %cst_2 = arith.constant dense<0.000000e+00> : vector<1xf32>
    %4 = vector.multi_reduction <add>, %3, %cst_2 [1, 2] : vector<1x8x128xf32> to vector<1xf32>
    %5 = vector.shape_cast %4 : vector<1xf32> to vector<1x1x1xf32>
    %cst_3 = arith.constant 9.765625E-4 : f32
    %6 = vector.broadcast %cst_3 : f32 to vector<1x1x1xf32>
    %7 = arith.mulf %2, %6 : vector<1x1x1xf32>
    %8 = arith.mulf %2, %7 : vector<1x1x1xf32>
    %9 = arith.subf %5, %8 : vector<1x1x1xf32>
    %cst_4 = arith.constant 9.77517105E-4 : f32
    %10 = vector.broadcast %cst_4 : f32 to vector<1x1x1xf32>
    %11 = arith.mulf %9, %10 : vector<1x1x1xf32>
    %cst_5 = arith.constant 0.000000e+00 : f32
    %12 = vector.broadcast %cst_5 : f32 to vector<1x1x1xf32>
    %13 = arith.maximumf %11, %12 : vector<1x1x1xf32>
    %cst_6 = arith.constant 9.99999993E-9 : f32
    %14 = vector.broadcast %cst_6 : f32 to vector<1x1x1xf32>
    %15 = arith.addf %13, %14 : vector<1x1x1xf32>
    %16 = math.rsqrt %15 : vector<1x1x1xf32>
    %17 = vector.broadcast %7 : vector<1x1x1xf32> to vector<1x8x128xf32>
    %18 = arith.subf %0, %17 : vector<1x8x128xf32>
    %19 = vector.broadcast %16 : vector<1x1x1xf32> to vector<1x8x128xf32>
    %20 = arith.mulf %18, %19 : vector<1x8x128xf32>
    %c0_7 = arith.constant 0 : index
    %c0_8 = arith.constant 0 : index
    %c0_9 = arith.constant 0 : index
    %21 = vector.load %arg2[%c0_7, %c0_8, %c0_9] : memref<1x8x128xf32, #tpu.memory_space<vmem>>, vector<1x8x128xf32>
    tpu.vector_store %arg2[%c0_7, %c0_8, %c0_9], %20 {strides = array<i32>} : memref<1x8x128xf32, #tpu.memory_space<vmem>>, vector<1x8x128xf32>,
    return
  }
  func.func @transform_0(%arg0: i32) -> (i32, i32, i32) {
    %c0_i32 = arith.constant 0 : i32
    %c0_i32_0 = arith.constant 0 : i32
    %c0_i32_1 = arith.constant 0 : i32
    return %arg0, %c0_i32, %c0_i32_0 : i32, i32, i32
  }
  func.func @transform_1(%arg0: i32) -> (i32, i32, i32) {
    %c0_i32 = arith.constant 0 : i32
    %c0_i32_0 = arith.constant 0 : i32
    %c0_i32_1 = arith.constant 0 : i32
    return %arg0, %c0_i32, %c0_i32_0 : i32, i32, i32
  }
}

</mosaic_0001>

<bundles_post_ra>
// kernel: tpu_custom_call.1
= control target key start
LH: loop header
LB: loop body
LE: loop exit
PB: predicated region body
PF: predicated region fallthrough
CT: control target
= control target key end

     0   :  { %6 = vsyncpa [#allocation3], 0  ;;  %s579_s0 = inlined_call_operand.hbm [shape: f32[2,8,128], index: 0, kind: input, shape index: {}]   ;;  %s580_s1 = inlined_call_operand.hbm [shape: f32[2,8,128], index: 1, kind: output, shape index: {}]  }
   0x1   :  { %8 = vsyncpa [#allocation3 + $0x1], 0 }
   0x2   :  { %9 = vsyncpa [#allocation4], 0 }
   0x3   :  { %11 = vsyncpa [#allocation4 + $0x1], 0  ;;  %s414_s6 = smov 0   ;;  %s416_s7 = smov 0  }
   0x4   :  { %s418_s8 = smov 0   ;;  %s420_s9 = smov 0  }
   0x5 LB: > { %s435_s10 = sadd.s32 4294967295, %s400_s9   ;;  %s244_s11 = sadd.s32 4294967294, %s400_s9   ;;  %s400_s9 = sphi %s420_s9, %s595_s9   ;;  %s396_s8 = sphi %s418_s8, %s594_s8   ;;  %s392_s7 = sphi %s416_s7, %s593_s7   ;;  %s388_s6 = sphi %s414_s6, %s592_s6  }
   0x6   : > { %s439_s12 = sadd.s32 1, %s400_s9   ;;  %s24_s13 = sadd.s32 1, %s396_s8 }
   0x7   : > { %s21_s14 = ssub.s32 %s400_s9, %s439_s12  ;;  %p31_p0 = scmp.ne.s32.totalorder %s396_s8, %s392_s7 }
   0x8   : > { %p22_p1 = scmp.eq.s32.totalorder %s21_s14, 0  ;;  %p32_p2 = scmp.eq.s32.totalorder %s400_s9, 0 }
   0x9   : > { %p37_p3 = scmp.ne.s32.totalorder %s392_s7, %s388_s6  ;;  %p38_p4 = scmp.eq.s32.totalorder %s435_s10, 0 }
   0xa   : > { %s451_s15 = scalar_select %p22_p1, %s396_s8, %s24_s13  }
   0xb   : > { %p453_p5 = por %p32_p2, %p31_p0  ;;  %p457_p6 = por %p38_p4, %p37_p3 }
   0xc   : > { %p61_p7 = scmp.eq.s32.totalorder %s435_s10, 1  ;;  %p67_p8 = scmp.eq.s32.totalorder %s244_s11, 1 }
   0xd   : > { %p268_p10 = scmp.lt.s32.totalorder %s400_s9, 2  ;;  %s87_s20 = sand.u32 1, %s396_s8  }
   0xe   : > { %p464_p11 = por %p61_p7, %p31_p0  ;;  %p468_p12 = por %p67_p8, %p37_p3 }
   0xf   : > { %s248_s21 = sshll.u32 %s400_s9, 7  ;;  %s247_s22 = sshll.u32 %s87_s20, 3 }
  0x10   : > { %s584_s18 = scalar_select %p464_p11, 1, 0 }
  0x11   : > { %s585_s19 = scalar_select %p468_p12, 1, 0 }
  0x12   : > { %s477_s25 = scalar_lea.hbm %s579_s0, %s248_s21  ;;  %s91_s26 = scalar_lea.vmem [#allocation2], %s247_s22 }
  0x13   : > { %s98_s27 = sshll.u32 %s91_s26, 4  ;;  %p481_p13 = pnand %p268_p10, %p453_p5  ;;  %s485_s27 = int_to_ptr.vmem [resolvable:$true] %s98_s27 }
  0x14   : > { %s88_s29 = scalar_lea.sflag [#allocation3], %s87_s20  ;;  %s304_s30 = scalar_lea.hbm %s477_s25, 128 }
  0x15   : > { %p305_p2 = scmp.ne.s32.totalorder %s477_s25, %s304_s30  ;;  %p306_p3 = pneg %p481_p13 }
  0x16   : > { %s309_s4 = scalar_lea.hbm %s579_s0, 256  ;;  %p310_p5 = scmp.lt.u32.totalorder %s477_s25, %s579_s0 }
  0x17   : > { %p307_p4 = pnand %p306_p3, %p305_p2  ;;  %p311_p8 = scmp.lt.u32.totalorder %s309_s4, %s304_s30 }
  0x18   : > { %p313_p9 = scmp.lt.u32.totalorder %s304_s30, %s477_s25 }
  0x19   : > { %p308_p7 = pneg %p307_p4  ;;  %p312_p10 = por %p311_p8, %p310_p5 }
  0x1b   : > { %p314_p0 = por %p313_p9, %p312_p10 }
  0x1d   : > { %p315_p1 = pnand %p314_p0, %p308_p7 }
  0x1f   : > { %318 = shalt.err (!%p315_p1)
}
  0x20   : > { %s319_s13 = scalar_lea.vmem %s485_s27, 128  ;;  %s402_s14 = smov [#allocation2]  }
  0x21   : > { %p320_p2 = scmp.ne.s32.totalorder %s485_s27, %s319_s13  ;;  %s324_s16 = sshll.u32 %s402_s14, 4  ;;  %s325_s16 = int_to_ptr.vmem [resolvable:$false] %s324_s16 }
  0x22   : > { %s326_s20 = scalar_lea.vmem %s325_s16, 256  ;;  %p327_p11 = scmp.lt.s32.totalorder %s485_s27, %s325_s16 }
  0x23   : > { %p322_p4 = pnand %p320_p2, %p306_p3  ;;  %p328_p5 = scmp.lt.s32.totalorder %s326_s20, %s319_s13 }
  0x25   : > { %p323_p12 = pneg %p322_p4  ;;  %p329_p8 = por %p328_p5, %p327_p11 }
  0x27   : > { %p330_p9 = pnand %p329_p8, %p323_p12 }
  0x29   : > { %333 = shalt.err (!%p330_p9)
}
  0x2a   : > { %263 = dma.hbm_to_vmem [thread:$0]  (!%p481_p13), %s477_s25, 128, %s485_s27, %s88_s29  }
  0x2b   : > { %p587_p0 = scmp.lt.s32.totalorder %s400_s9, 3  ;;  %p588_p1 = scmp.ge.s32.totalorder %s400_s9, 1 }
  0x2d   : > { %p104_p3 = pnand %p588_p1, %p587_p0 }
  0x2e   : > { %s519_s21 = sand.u32 (!%p104_p3), 1, %s392_s7  }
  0x2f   : > { %107 = sbr.rel (%p104_p3) target bundleno = 249 (0xf9), region = 24  ;;  %s250_s22 = sshll.u32 (!%p104_p3), %s519_s21, 3 }
  0x30   : > { %s110_s23 = scalar_lea.sflag (!%p104_p3), [#allocation3], %s519_s21  ;;  %s113_s24 = scalar_lea.vmem (!%p104_p3), [#allocation2], %s250_s22 }
  0x36   : > { %379 = dma.done.wait (%p457_p6), %s110_s23, 128  }
  0x37   : > { %381 = vsyncadd (%p457_p6), %s110_s23, 4294967168  ;;  %v132_v0 = vld [vmem:[%s113_s24] sm:$0xff]  ;;  %s253_s17 = sshll.u32 %s435_s10, 7  ;;  %s131_s25 = scalar_lea.vmem [#allocation5], %s250_s22 }
  0x38   : > { %133 = vadd.xlane.f32.xlu0 %v132_v0  ;;  %v141_v1 = vmul.f32 %v132_v0, %v132_v0  ;;  %s174_s26 = sshll.u32 %s131_s25, 4  ;;  %s535_s29 = scalar_lea.hbm %s580_s1, %s253_s17  ;;  %s537_s26 = int_to_ptr.vmem [resolvable:$true] %s174_s26 }
  0x39   : > { %s161_s30 = scalar_lea.sflag [#allocation4], %s519_s21  ;;  %s334_s2 = scalar_lea.vmem %s537_s26, 128 }
  0x3a   : > { %p335_p6 = scmp.ne.s32.totalorder %s537_s26, %s334_s2  ;;  %p589_p11 = scmp.ne.s32.totalorder %s584_s18, 0 }
  0x3b   : > { %s403_s10 = smov [#allocation5]  }
  0x3c   : > { %142 = vadd.xlane.f32.xlu0 %v141_v1  ;;  %p336_p12 = pnand %p335_p6, %p589_p11  ;;  %s338_s3 = sshll.u32 %s403_s10, 4  ;;  %s339_s3 = int_to_ptr.vmem [resolvable:$false] %s338_s3 }
  0x3d   : > { %s340_s4 = scalar_lea.vmem %s339_s3, 256  ;;  %p341_p7 = scmp.lt.s32.totalorder %s537_s26, %s339_s3 }
  0x3e   : > { %p337_p13 = pneg %p336_p12  ;;  %p342_p10 = scmp.lt.s32.totalorder %s340_s4, %s334_s2 }
  0x40   : > { %p343_p2 = por %p342_p10, %p341_p7 }
  0x42   : > { %p344_p4 = pnand %p343_p2, %p337_p13 }
  0xc5   : > { %v134_v2 = vpop.xlane.xlu0 %133 }
  0xc6   : > { %v135_v3 = vrot.slane %v134_v2, 4 }
  0xc8   : > { %v136_v4 = vadd.f32 %v135_v3, %v134_v2 }
  0xc9   : > { %v143_v5 = vpop.xlane.xlu0 %142 }
  0xca   : > { %v137_v6 = vrot.slane %v136_v4, 2  ;;  %v144_v7 = vrot.slane %v143_v5, 4 }
  0xcc   : > { %v138_v8 = vadd.f32 %v137_v6, %v136_v4  ;;  %v145_v9 = vadd.f32 %v144_v7, %v143_v5 }
  0xce   : > { %v139_v10 = vrot.slane %v138_v8, 1  ;;  %v146_v11 = vrot.slane %v145_v9, 2 }
  0xd0   : > { %v140_v12 = vadd.f32 %v139_v10, %v138_v8  ;;  %v147_v13 = vadd.f32 %v146_v11, %v145_v9 }
  0xd2   : > { %v150_v14 = vmul.f32 0.0009765625, %v140_v12  ;;  %v148_v15 = vrot.slane %v147_v13, 1 }
  0xd4   : > { %v151_v16 = vmul.f32 %v150_v14, %v140_v12  ;;  %v149_v17 = vadd.f32 %v148_v15, %v147_v13  ;;  %v157_v22 = vsub.f32 %v132_v0, %v150_v14 }
  0xd6   : > { %v152_v18 = vsub.f32 %v149_v17, %v151_v16 }
  0xd8   : > { %v153_v19 = vmul.f32 0.0009775171, %v152_v18 }
  0xda   : > { %v154_v20 = vmax.f32 %v153_v19, 0.0 }
  0xdc   : > { %v155_v21 = vadd.f32 1e-08, %v154_v20 }
  0xde   : > { %302 = vrsqrt.f32 %v155_v21 }
  0xe8   : > { %v303_v23 = vpop.eup %302 }
  0xe9   : > { %v158_v24 = vmul.f32 %v303_v23, %v157_v22 }
  0xeb   : > { %159 = vst [vmem:[%s131_s25] sm:$0xff] %v158_v24 }
  0xec   : > { %347 = shalt.err (!%p344_p4)
}
  0xed   : > { %s348_s5 = scalar_lea.hbm %s535_s29, 128  ;;  %s352_s14 = scalar_lea.hbm %s580_s1, 256 }
  0xee   : > { %p349_p5 = scmp.ne.s32.totalorder %s535_s29, %s348_s5  ;;  %p353_p0 = scmp.lt.u32.totalorder %s535_s29, %s580_s1 }
  0xef   : > { %p354_p1 = scmp.lt.u32.totalorder %s352_s14, %s348_s5  ;;  %p356_p6 = scmp.lt.u32.totalorder %s348_s5, %s535_s29 }
  0xf0   : > { %p350_p8 = pnand %p349_p5, %p589_p11 }
  0xf1   : > { %p355_p3 = por %p354_p1, %p353_p0 }
  0xf2   : > { %p351_p9 = pneg %p350_p8 }
  0xf3   : > { %p357_p12 = por %p356_p6, %p355_p3 }
  0xf5   : > { %p358_p13 = pnand %p357_p12, %p351_p9 }
  0xf7   : > { %361 = shalt.err (!%p358_p13)
}
  0xf8   : > { %258 = dma.vmem_to_hbm [thread:$0]  (%p589_p11), %s537_s26, 128, %s535_s29, %s161_s30  }
  0xf9 PF: > { %s186_s21 = sand.u32 1, %s388_s6   ;;  %p590_p7 = scmp.ne.s32.totalorder %s585_s19, 0 }
  0xfa   : > { %p591_p10 = scmp.ge.s32.totalorder %s400_s9, 2  ;;  %s187_s22 = scalar_lea.sflag [#allocation4], %s186_s21 }
  0xfc   : > { %p265_p2 = pnand %p591_p10, %p590_p7 }
  0xfe   : > { %383 = dma.done.wait (!%p265_p2), %s187_s22, 128  }
  0xff   : > { %385 = vsyncadd (!%p265_p2), %s187_s22, 4294967168  ;;  %p14_p4 = scmp.ge.s32.totalorder %s439_s12, 4   ;;  %s592_s6 = smov %s392_s7 }
 0x100   : > { %s593_s7 = smov %s396_s8  ;;  %s594_s8 = smov %s451_s15 }
 0x101   : > { %s595_s9 = smov %s439_s12  ;;  %16 = sbr.rel (!%p14_p4) target bundleno = 5 (0x5), region = 69 }
 0x108   :  { %192 = vsyncpa [#allocation3], 1 }
 0x109   :  { %194 = vsyncpa [#allocation3 + $0x1], 1 }
 0x10a   :  { %195 = vsyncpa [#allocation4], 1 }
 0x10b   :  { %197 = vsyncpa [#allocation4 + $0x1], 1 }

</bundles_post_ra>
